<compile_context>
chip_gen: v6e
topology: v6e:2x2x1
jax: 0.10.0
libtpu: 0.0.40
codegen_flags: <defaults>
</compile_context>

<pallas_src>
import functools

import jax
import jax.numpy as jnp
from jax.experimental import pallas as pl
from jax.experimental.pallas import tpu as pltpu

H1, H2 = 400, 300          # logical hidden widths (module spec)
H1_PAD, H2_PAD = 512, 512  # lane/256-aligned padded widths
OUT_PAD = 128              # lane-dense Q-value output width


def _round_up(x, m):
    return (x + m - 1) // m * m


def dqn_mlp_kernel(x_ref, w1_ref, b1_ref, w2_ref, b2_ref, w3_ref, b3_ref,
                   q_ref, act_ref, *, n_actions):
    # fc1: relu(x @ W1 + b1) -- bf16 MXU inputs, f32 accumulation, f32 VPU epilogue
    h1 = jnp.dot(x_ref[...].astype(jnp.bfloat16), w1_ref[...],
                 preferred_element_type=jnp.float32)
    h1 = jnp.maximum(h1 + b1_ref[...], 0.0)

    # fc2: relu(h1 @ W2 + b2)
    h2 = jnp.dot(h1.astype(jnp.bfloat16), w2_ref[...],
                 preferred_element_type=jnp.float32)
    h2 = jnp.maximum(h2 + b2_ref[...], 0.0)

    # fc3: raw Q-values (padded columns are exactly zero by construction)
    q = jnp.dot(h2.astype(jnp.bfloat16), w3_ref[...],
                preferred_element_type=jnp.float32) + b3_ref[...]
    q_ref[...] = q.astype(q_ref.dtype)

    # Fused greedy-action argmax over the real (unpadded) action columns.
    col = jax.lax.broadcasted_iota(jnp.int32, q.shape, 1)
    neg = jnp.finfo(jnp.float32).min
    qm = jnp.where(col < n_actions, q, neg)
    qmax = jnp.max(qm, axis=-1, keepdims=True)
    idx = jnp.min(jnp.where(qm >= qmax, col, q.shape[-1]), axis=-1, keepdims=True)
    act_ref[...] = idx.astype(jnp.int32)


def prepare_params(w1, b1, w2, b2, w3, b3):
    """Zero-pad to lane-aligned widths; cast weights to bf16 (f32 accumulation in
    the kernel). Weights are W[in, out] (transpose of PyTorch nn.Linear.weight)."""
    in_dims = w1.shape[0]
    n_actions = w3.shape[1]
    w1p = jnp.zeros((in_dims, H1_PAD), jnp.float32).at[:, :H1].set(w1).astype(jnp.bfloat16)
    b1p = jnp.zeros((1, H1_PAD), jnp.float32).at[:, :H1].set(b1.reshape(1, -1))
    w2p = jnp.zeros((H1_PAD, H2_PAD), jnp.float32).at[:H1, :H2].set(w2).astype(jnp.bfloat16)
    b2p = jnp.zeros((1, H2_PAD), jnp.float32).at[:, :H2].set(b2.reshape(1, -1))
    w3p = jnp.zeros((H2_PAD, OUT_PAD), jnp.float32).at[:H2, :n_actions].set(w3).astype(jnp.bfloat16)
    b3p = jnp.zeros((1, OUT_PAD), jnp.float32).at[:, :n_actions].set(b3.reshape(1, -1))
    return (w1p, b1p, w2p, b2p, w3p, b3p), n_actions


def dqn_forward(state, params, n_actions, *, b_tile_max=256):
    """state: [B, input_dims] f32. Returns (q_values [B, n_actions] f32,
    greedy_action [B] int32)."""
    w1p, b1p, w2p, b2p, w3p, b3p = params
    B, in_dims = state.shape

    # Sublane-aligned batch tile; capped so activations + weights stay far under
    # v7x's 64 MiB VMEM (tile <= 256 rows -> ~1.5 MiB total working set).
    b_tile = b_tile_max if B >= b_tile_max else _round_up(B, 8)
    b_pad = _round_up(B, b_tile)
    x = jnp.zeros((b_pad, in_dims), jnp.float32).at[:B].set(state)

    pinned = lambda i: (0, 0)
    kernel = functools.partial(dqn_mlp_kernel, n_actions=n_actions)

    flops = 2 * b_pad * (in_dims * H1_PAD + H1_PAD * H2_PAD + H2_PAD * OUT_PAD)
    bytes_accessed = (x.size * 4
                      + (w1p.size + w2p.size + w3p.size) * 2
                      + (b1p.size + b2p.size + b3p.size) * 4
                      + b_pad * OUT_PAD * 4 + b_pad * 4)

    q_pad, act_pad = pl.pallas_call(
        kernel,
        out_shape=(jax.ShapeDtypeStruct((b_pad, OUT_PAD), jnp.float32),
                   jax.ShapeDtypeStruct((b_pad, 1), jnp.int32)),
        grid_spec=pltpu.PrefetchScalarGridSpec(
            num_scalar_prefetch=0,
            grid=(b_pad // b_tile,),
            in_specs=[
                pl.BlockSpec((b_tile, in_dims), lambda i: (i, 0)),   # state tile
                pl.BlockSpec((in_dims, H1_PAD), pinned),             # W1 (pinned)
                pl.BlockSpec((1, H1_PAD), pinned),                   # b1
                pl.BlockSpec((H1_PAD, H2_PAD), pinned),              # W2
                pl.BlockSpec((1, H2_PAD), pinned),                   # b2
                pl.BlockSpec((H2_PAD, OUT_PAD), pinned),             # W3
                pl.BlockSpec((1, OUT_PAD), pinned),                  # b3
            ],
            out_specs=(
                pl.BlockSpec((b_tile, OUT_PAD), lambda i: (i, 0)),   # Q-values
                pl.BlockSpec((b_tile, 1), lambda i: (i, 0)),         # greedy action
            ),
        ),
        compiler_params=pltpu.CompilerParams(
            dimension_semantics=("parallel",),       # shards batch across TCs on v7x
            vmem_limit_bytes=64 * 1024 * 1024,
        ),
        cost_estimate=pl.CostEstimate(flops=flops, transcendentals=0,
                                      bytes_accessed=bytes_accessed),
    )(x, w1p, b1p, w2p, b2p, w3p, b3p)

    return q_pad[:B, :n_actions], act_pad[:B, 0]


def xavier_uniform(key, fan_in, fan_out, dtype=jnp.float32):
    # Matches nn.init.xavier_uniform_ (gain=1): U(-a, a), a = sqrt(6/(fan_in+fan_out))
    a = (6.0 / (fan_in + fan_out)) ** 0.5
    return jax.random.uniform(key, (fan_in, fan_out), dtype, minval=-a, maxval=a)


if __name__ == "__main__":
    # Small shapes consistent with the module: input_dims=8, n_actions=4, batch=2.
    input_dims = 8
    n_actions = 4
    batch = 2

    key = jax.random.PRNGKey(0)
    k_x, k1, k2, k3 = jax.random.split(key, 4)

    # Deterministic parameter init (xavier_uniform weights, zero biases),
    # mirroring _reset_parameters(). Stored as W[in, out] (transpose of PyTorch).
    w1 = xavier_uniform(k1, input_dims, H1)
    b1 = jnp.zeros((1, H1), jnp.float32)
    w2 = xavier_uniform(k2, H1, H2)
    b2 = jnp.zeros((1, H2), jnp.float32)
    w3 = xavier_uniform(k3, H2, n_actions)
    b3 = jnp.zeros((1, n_actions), jnp.float32)

    state = jax.random.normal(k_x, (batch, input_dims), jnp.float32)

    params, n_act = prepare_params(w1, b1, w2, b2, w3, b3)
    q, greedy = dqn_forward(state, params, n_act)
    q = jax.block_until_ready(q)
    greedy = jax.block_until_ready(greedy)

    # Reference 1: identical bf16-weight / f32-accumulate math in plain JAX.
    w1b, b1p, w2b, b2p, w3b, b3p = params
    xb = state.astype(jnp.bfloat16)
    h1 = jnp.maximum(jnp.dot(xb, w1b, preferred_element_type=jnp.float32) + b1p, 0.0)
    h2 = jnp.maximum(jnp.dot(h1.astype(jnp.bfloat16), w2b,
                             preferred_element_type=jnp.float32) + b2p, 0.0)
    ref_q = (jnp.dot(h2.astype(jnp.bfloat16), w3b,
                     preferred_element_type=jnp.float32) + b3p)[:, :n_actions]

    # Reference 2: full-f32 module semantics (loose tol, bf16 MXU inputs in kernel).
    h1f = jnp.maximum(state @ w1 + b1, 0.0)
    h2f = jnp.maximum(h1f @ w2 + b2, 0.0)
    ref_f32 = h2f @ w3 + b3

    assert q.shape == (batch, n_actions)
    assert greedy.shape == (batch,)
    assert jnp.allclose(q, ref_q, atol=2e-3, rtol=2e-3)
    assert jnp.allclose(q, ref_f32, atol=5e-2, rtol=5e-2)
    assert jnp.array_equal(greedy, jnp.argmax(ref_q, axis=-1))

    # TODO(synk): optimizer (Adam), MSE loss, and checkpoint I/O from the module
    # are training/host-side concerns with no Pallas equivalent.
    print("KERNEL_OK")
</pallas_src>

<mosaic_0001>
module attributes {stable_mosaic.version = 11 : i64} {
  func.func @dqn_mlp_kernel(%arg0: i32, %arg1: memref<8x8xf32, #tpu.memory_space<vmem>>, %arg2: memref<8x512xbf16, #tpu.memory_space<vmem>>, %arg3: memref<1x512xf32, #tpu.memory_space<vmem>>, %arg4: memref<512x512xbf16, #tpu.memory_space<vmem>>, %arg5: memref<1x512xf32, #tpu.memory_space<vmem>>, %arg6: memref<512x128xbf16, #tpu.memory_space<vmem>>, %arg7: memref<1x128xf32, #tpu.memory_space<vmem>>, %arg8: memref<8x128xf32, #tpu.memory_space<vmem>>, %arg9: memref<8x1xi32, #tpu.memory_space<vmem>>) attributes {dimension_semantics = [#tpu.dimension_semantics<parallel>], iteration_bounds = array<i64: 1>, scalar_prefetch = 0 : i64, scratch_operands = 0 : i64, tpu.core_type = #tpu.core_type<tc>, window_params = [{transform_indices = @transform_0, window_bounds = array<i64: 8, 8>}, {pipeline_mode = #tpu.pipeline_mode<synchronous>, transform_indices = @transform_1, window_bounds = array<i64: 8, 512>}, {pipeline_mode = #tpu.pipeline_mode<synchronous>, transform_indices = @transform_2, window_bounds = array<i64: 1, 512>}, {pipeline_mode = #tpu.pipeline_mode<synchronous>, transform_indices = @transform_3, window_bounds = array<i64: 512, 512>}, {pipeline_mode = #tpu.pipeline_mode<synchronous>, transform_indices = @transform_4, window_bounds = array<i64: 1, 512>}, {pipeline_mode = #tpu.pipeline_mode<synchronous>, transform_indices = @transform_5, window_bounds = array<i64: 512, 128>}, {pipeline_mode = #tpu.pipeline_mode<synchronous>, transform_indices = @transform_6, window_bounds = array<i64: 1, 128>}, {transform_indices = @transform_7, window_bounds = array<i64: 8, 128>}, {transform_indices = @transform_8, window_bounds = array<i64: 8, 1>}]} {
    %c0 = arith.constant 0 : index
    %c0_0 = arith.constant 0 : index
    %0 = vector.load %arg1[%c0, %c0_0] : memref<8x8xf32, #tpu.memory_space<vmem>>, vector<8x8xf32>
    %1 = arith.truncf %0 : vector<8x8xf32> to vector<8x8xbf16>
    %c0_1 = arith.constant 0 : index
    %c0_2 = arith.constant 0 : index
    %2 = vector.load %arg2[%c0_1, %c0_2] : memref<8x512xbf16, #tpu.memory_space<vmem>>, vector<8x512xbf16>
    %cst = arith.constant dense<0.000000e+00> : vector<8x512xf32>
    %3 = tpu.matmul %1, %2, %cst {dimension_numbers = #tpu.dot_dimension_numbers<[1], [0], [0], [1], [0, 0, 1, 1], [], []>} : vector<8x8xbf16>, vector<8x512xbf16>, vector<8x512xf32> -> vector<8x512xf32>
    %c0_3 = arith.constant 0 : index
    %c0_4 = arith.constant 0 : index
    %4 = vector.load %arg3[%c0_3, %c0_4] : memref<1x512xf32, #tpu.memory_space<vmem>>, vector<1x512xf32>
    %5 = vector.broadcast %4 : vector<1x512xf32> to vector<8x512xf32>
    %6 = arith.addf %3, %5 : vector<8x512xf32>
    %cst_5 = arith.constant 0.000000e+00 : f32
    %7 = vector.broadcast %cst_5 : f32 to vector<8x512xf32>
    %8 = arith.maximumf %6, %7 : vector<8x512xf32>
    %9 = arith.truncf %8 : vector<8x512xf32> to vector<8x512xbf16>
    %c0_6 = arith.constant 0 : index
    %c0_7 = arith.constant 0 : index
    %10 = vector.load %arg4[%c0_6, %c0_7] : memref<512x512xbf16, #tpu.memory_space<vmem>>, vector<512x512xbf16>
    %cst_8 = arith.constant dense<0.000000e+00> : vector<8x512xf32>
    %11 = tpu.matmul %9, %10, %cst_8 {dimension_numbers = #tpu.dot_dimension_numbers<[1], [0], [0], [1], [0, 0, 1, 1], [], []>} : vector<8x512xbf16>, vector<512x512xbf16>, vector<8x512xf32> -> vector<8x512xf32>
    %c0_9 = arith.constant 0 : index
    %c0_10 = arith.constant 0 : index
    %12 = vector.load %arg5[%c0_9, %c0_10] : memref<1x512xf32, #tpu.memory_space<vmem>>, vector<1x512xf32>
    %13 = vector.broadcast %12 : vector<1x512xf32> to vector<8x512xf32>
    %14 = arith.addf %11, %13 : vector<8x512xf32>
    %cst_11 = arith.constant 0.000000e+00 : f32
    %15 = vector.broadcast %cst_11 : f32 to vector<8x512xf32>
    %16 = arith.maximumf %14, %15 : vector<8x512xf32>
    %17 = arith.truncf %16 : vector<8x512xf32> to vector<8x512xbf16>
    %c0_12 = arith.constant 0 : index
    %c0_13 = arith.constant 0 : index
    %18 = vector.load %arg6[%c0_12, %c0_13] : memref<512x128xbf16, #tpu.memory_space<vmem>>, vector<512x128xbf16>
    %cst_14 = arith.constant dense<0.000000e+00> : vector<8x128xf32>
    %19 = tpu.matmul %17, %18, %cst_14 {dimension_numbers = #tpu.dot_dimension_numbers<[1], [0], [0], [1], [0, 0, 1, 1], [], []>} : vector<8x512xbf16>, vector<512x128xbf16>, vector<8x128xf32> -> vector<8x128xf32>
    %c0_15 = arith.constant 0 : index
    %c0_16 = arith.constant 0 : index
    %20 = vector.load %arg7[%c0_15, %c0_16] : memref<1x128xf32, #tpu.memory_space<vmem>>, vector<1x128xf32>
    %21 = vector.broadcast %20 : vector<1x128xf32> to vector<8x128xf32>
    %22 = arith.addf %19, %21 : vector<8x128xf32>
    %c0_17 = arith.constant 0 : index
    %c0_18 = arith.constant 0 : index
    %23 = vector.load %arg8[%c0_17, %c0_18] : memref<8x128xf32, #tpu.memory_space<vmem>>, vector<8x128xf32>
    tpu.vector_store %arg8[%c0_17, %c0_18], %22 {strides = array<i32>} : memref<8x128xf32, #tpu.memory_space<vmem>>, vector<8x128xf32>,
    %24 = tpu.iota {dimensions = array<i32: 1>} : vector<8x128xi32>
    %c4_i32 = arith.constant 4 : i32
    %25 = vector.broadcast %c4_i32 : i32 to vector<8x128xi32>
    %26 = arith.cmpi slt, %24, %25 : vector<8x128xi32>
    %cst_19 = arith.constant -3.40282347E+38 : f32
    %27 = vector.broadcast %cst_19 : f32 to vector<8x128xf32>
    %28 = arith.select %26, %22, %27 : vector<8x128xi1>, vector<8x128xf32>
    %cst_20 = arith.constant dense<0xFF800000> : vector<8xf32>
    %29 = vector.multi_reduction <maximumf>, %28, %cst_20 [1] : vector<8x128xf32> to vector<8xf32>
    %30 = vector.shape_cast %29 : vector<8xf32> to vector<8x1xf32>
    %31 = vector.broadcast %30 : vector<8x1xf32> to vector<8x128xf32>
    %32 = arith.cmpf oge, %28, %31 : vector<8x128xf32>
    %c128_i32 = arith.constant 128 : i32
    %33 = vector.broadcast %c128_i32 : i32 to vector<8x128xi32>
    %34 = arith.select %32, %24, %33 : vector<8x128xi1>, vector<8x128xi32>
    %cst_21 = arith.constant dense<2147483647> : vector<8xi32>
    %35 = vector.multi_reduction <minsi>, %34, %cst_21 [1] : vector<8x128xi32> to vector<8xi32>
    %36 = vector.shape_cast %35 : vector<8xi32> to vector<8x1xi32>
    %c0_22 = arith.constant 0 : index
    %c0_23 = arith.constant 0 : index
    %37 = vector.load %arg9[%c0_22, %c0_23] : memref<8x1xi32, #tpu.memory_space<vmem>>, vector<8x1xi32>
    tpu.vector_store %arg9[%c0_22, %c0_23], %36 {strides = array<i32>} : memref<8x1xi32, #tpu.memory_space<vmem>>, vector<8x1xi32>,
    return
  }
  func.func @transform_0(%arg0: i32) -> (i32, i32) {
    %c0_i32 = arith.constant 0 : i32
    %c0_i32_0 = arith.constant 0 : i32
    return %arg0, %c0_i32 : i32, i32
  }
  func.func @transform_1(%arg0: i32) -> (i32, i32) {
    %c0_i32 = arith.constant 0 : i32
    %c0_i32_0 = arith.constant 0 : i32
    %c0_i32_1 = arith.constant 0 : i32
    return %c0_i32, %c0_i32_0 : i32, i32
  }
  func.func @transform_2(%arg0: i32) -> (i32, i32) {
    %c0_i32 = arith.constant 0 : i32
    %c0_i32_0 = arith.constant 0 : i32
    %c0_i32_1 = arith.constant 0 : i32
    return %c0_i32, %c0_i32_0 : i32, i32
  }
  func.func @transform_3(%arg0: i32) -> (i32, i32) {
    %c0_i32 = arith.constant 0 : i32
    %c0_i32_0 = arith.constant 0 : i32
    %c0_i32_1 = arith.constant 0 : i32
    return %c0_i32, %c0_i32_0 : i32, i32
  }
  func.func @transform_4(%arg0: i32) -> (i32, i32) {
    %c0_i32 = arith.constant 0 : i32
    %c0_i32_0 = arith.constant 0 : i32
    %c0_i32_1 = arith.constant 0 : i32
    return %c0_i32, %c0_i32_0 : i32, i32
  }
  func.func @transform_5(%arg0: i32) -> (i32, i32) {
    %c0_i32 = arith.constant 0 : i32
    %c0_i32_0 = arith.constant 0 : i32
    %c0_i32_1 = arith.constant 0 : i32
    return %c0_i32, %c0_i32_0 : i32, i32
  }
  func.func @transform_6(%arg0: i32) -> (i32, i32) {
    %c0_i32 = arith.constant 0 : i32
    %c0_i32_0 = arith.constant 0 : i32
    %c0_i32_1 = arith.constant 0 : i32
    return %c0_i32, %c0_i32_0 : i32, i32
  }
  func.func @transform_7(%arg0: i32) -> (i32, i32) {
    %c0_i32 = arith.constant 0 : i32
    %c0_i32_0 = arith.constant 0 : i32
    return %arg0, %c0_i32 : i32, i32
  }
  func.func @transform_8(%arg0: i32) -> (i32, i32) {
    %c0_i32 = arith.constant 0 : i32
    %c0_i32_0 = arith.constant 0 : i32
    return %arg0, %c0_i32 : i32, i32
  }
}

</mosaic_0001>

<bundles_post_ra>
// kernel: tpu_custom_call.1
= control target key start
LH: loop header
LB: loop body
LE: loop exit
PB: predicated region body
PF: predicated region fallthrough
CT: control target
= control target key end

     0   :  { %14 = vsyncpa [#allocation3], 0  ;;  %s2281_s0 = inlined_call_operand.hbm [shape: f32[8,8], index: 0, kind: input, shape index: {}]   ;;  %s2282_s1 = inlined_call_operand.hbm [shape: bf16[8,512], index: 1, kind: input, shape index: {}]   ;;  %s2283_s2 = inlined_call_operand.hbm [shape: f32[1,512], index: 2, kind: input, shape index: {}]   ;;  %s2284_s3 = inlined_call_operand.hbm [shape: bf16[512,512], index: 3, kind: input, shape index: {}]   ;;  %s2285_s4 = inlined_call_operand.vmem [shape: f32[1,512], index: 4, kind: input, shape index: {}]   ;;  %s2286_s5 = inlined_call_operand.hbm [shape: bf16[512,128], index: 5, kind: input, shape index: {}]   ;;  %s2287_s6 = inlined_call_operand.vmem [shape: f32[1,128], index: 6, kind: input, shape index: {}]   ;;  %s2288_s7 = inlined_call_operand.hbm [shape: f32[8,128], index: 7, kind: output, shape index: {0}]   ;;  %s2289_s8 = inlined_call_operand.vmem [shape: s32[8,1], index: 8, kind: output, shape index: {1}]  }
   0x1   :  { %15 = vsyncpa [#allocation6], 0 }
   0x2   :  { %16 = vsyncpa [#allocation9], 0 }
   0x3   :  { %17 = vsyncpa [#allocation4], 0  ;;  %s2166_s27 = smov [#allocation5]   ;;  %s2167_s29 = smov [#allocation8]  }
   0x4   :  { %s34_s28 = sshll.u32 %s2166_s27, 4  ;;  %s53_s30 = sshll.u32 %s2167_s29, 4  ;;  %s35_s28 = int_to_ptr.vmem [resolvable:$true] %s34_s28  ;;  %s54_s30 = int_to_ptr.vmem [resolvable:$true] %s53_s30 }
   0x5   :  { %s2046_s9 = scalar_lea.vmem %s35_s28, 256  ;;  %p2051_p1 = scmp.lt.s32.totalorder %s35_s28, %s35_s28 }
   0x6   :  { %p2047_p0 = scmp.ne.s32.totalorder %s35_s28, %s2046_s9  ;;  %p2052_p2 = scmp.lt.s32.totalorder %s2046_s9, %s2046_s9 }
   0x8   :  { %p2053_p3 = por %p2052_p2, %p2051_p1 }
   0xa   :  { %p2054_p4 = pnand %p2053_p3, %p2047_p0 }
   0xc   :  { %2057 = shalt.err (!%p2054_p4)
}
   0xd   :  { %37 = dma.hbm_to_vmem [thread:$0]  %s2282_s1, 256, %s35_s28, [#allocation6]  }
   0xe   :  { %s2066_s12 = scalar_lea.vmem %s54_s30, 16384  ;;  %p2071_p6 = scmp.lt.s32.totalorder %s54_s30, %s54_s30 }
   0xf   :  { %p2067_p5 = scmp.ne.s32.totalorder %s54_s30, %s2066_s12  ;;  %p2072_p7 = scmp.lt.s32.totalorder %s2066_s12, %s2066_s12 }
  0x11   :  { %p2073_p8 = por %p2072_p7, %p2071_p6 }
  0x13   :  { %p2074_p9 = pnand %p2073_p8, %p2067_p5 }
  0x15   :  { %2077 = shalt.err (!%p2074_p9)
}
  0x16   :  { %s2168_s13 = smov 256   ;;  %s2169_s14 = smov 16  }
  0x17   :  { %59 = dma.hbm_to_vmem [thread:$0]  %s2284_s3, 16384, %s54_s30, [#allocation9], %s2168_s13, %s2168_s13, %s2169_s14  }
  0x18   :  { %s2170_s17 = smov [#allocation2]   ;;  %s2171_s19 = smov [#allocation7]  }
  0x19   :  { %s24_s18 = sshll.u32 %s2170_s17, 4  ;;  %s44_s20 = sshll.u32 %s2171_s19, 4  ;;  %s25_s18 = int_to_ptr.vmem [resolvable:$true] %s24_s18  ;;  %s45_s20 = int_to_ptr.vmem [resolvable:$true] %s44_s20 }
  0x1a   :  { %s2086_s1 = scalar_lea.vmem %s25_s18, 128  ;;  %p2091_p11 = scmp.lt.s32.totalorder %s25_s18, %s25_s18 }
  0x1b   :  { %p2087_p10 = scmp.ne.s32.totalorder %s25_s18, %s2086_s1  ;;  %p2092_p12 = scmp.lt.s32.totalorder %s2086_s1, %s2086_s1 }
  0x1d   :  { %p2093_p13 = por %p2092_p12, %p2091_p11 }
  0x1f   :  { %p2094_p0 = pnand %p2093_p13, %p2087_p10 }
  0x21   :  { %2097 = shalt.err (!%p2094_p0)
}
  0x22   :  { %27 = dma.hbm_to_vmem [thread:$0]  %s2281_s0, 128, %s25_s18, [#allocation3]  }
  0x23   :  { %s2106_s23 = scalar_lea.vmem %s45_s20, 64  ;;  %p2111_p2 = scmp.lt.s32.totalorder %s45_s20, %s45_s20 }
  0x24   :  { %p2107_p1 = scmp.ne.s32.totalorder %s45_s20, %s2106_s23  ;;  %p2112_p3 = scmp.lt.s32.totalorder %s2106_s23, %s2106_s23 }
  0x26   :  { %p2113_p4 = por %p2112_p3, %p2111_p2 }
  0x28   :  { %p2114_p5 = pnand %p2113_p4, %p2107_p1 }
  0x2a   :  { %2117 = shalt.err (!%p2114_p5)
}
  0x2b   :  { %47 = dma.hbm_to_vmem [thread:$0]  %s2283_s2, 64, %s45_s20, [#allocation6]  }
  0x2c   :  { %s2172_s25 = smov [#allocation10]  }
  0x2d   :  { %s67_s26 = sshll.u32 %s2172_s25, 4  ;;  %s68_s26 = int_to_ptr.vmem [resolvable:$true] %s67_s26 }
  0x2e   :  { %s2126_s27 = scalar_lea.vmem %s68_s26, 4096  ;;  %p2131_p7 = scmp.lt.s32.totalorder %s68_s26, %s68_s26 }
  0x2f   :  { %p2127_p6 = scmp.ne.s32.totalorder %s68_s26, %s2126_s27  ;;  %p2132_p8 = scmp.lt.s32.totalorder %s2126_s27, %s2126_s27 }
  0x31   :  { %p2133_p9 = por %p2132_p8, %p2131_p7 }
  0x33   :  { %p2134_p10 = pnand %p2133_p9, %p2127_p6 }
  0x35   :  { %2137 = shalt.err (!%p2134_p10)
}
  0x36   :  { %s2173_s0 = smov 64   ;;  %s2174_s28 = smov 4  }
  0x37   :  { %73 = dma.hbm_to_vmem [thread:$0]  %s2286_s5, 4096, %s68_s26, [#allocation9], %s2173_s0, %s2173_s0, %s2174_s28  }
  0x38   :  { %2158 = dma.done.wait [#allocation3], 128  }
  0x39   :  { %2159 = vsyncadd [#allocation3], 4294967168 }
  0x3a   :  { %2160 = dma.done.wait [#allocation6], 320  }
  0x3b   :  { %2161 = vsyncadd [#allocation6], 4294966976 }
  0x3c   :  { %2162 = dma.done.wait [#allocation9], 20480  }
  0x3d   :  { %2163 = vsyncadd [#allocation9], 4294946816  ;;  %v2175_v0 = vmov 0   ;;  %v94_v1 = vld [vmem:[#allocation5] sm:$0xff]  ;;  %vm132_vm0 = vcmask 1043456   ;;  %v95_v2 = vld [vmem:[#allocation5 + $0x8] sm:$0xff] }
  0x3e   :  { %177 = vmatprep.mubr.bf16.mxu0 %v2175_v0  ;;  %218 = vmatprep.mubr.bf16.mxu1 %v2175_v0  ;;  %v92_v3 = vld [vmem:[#allocation2] sm:$0xff]  ;;  %v1587_v4 = vcombine.high %v94_v1, %v94_v1  ;;  %v1589_v5 = vcombine.high %v95_v2, %v95_v2  ;;  %v1586_v6 = vcombine.low %v94_v1, %v94_v1  ;;  %v1814_v12 = vld [vmem:[#allocation8 + $0xe0] ss:$16 sps:$4 sm:$0xff]   ;;  %vm128_vm1 = vcmask 64512  }
  0x3f   :  { %v1588_v7 = vcombine.low %v95_v2, %v95_v2  ;;  %v1816_v8 = vld [vmem:[#allocation8 + $0xe4] ss:$16 sps:$4 sm:$0xff]   ;;  %v93_v11 = vpack.c.bf16 %v92_v3, %v92_v3  ;;  %v1817_v14 = vld [vmem:[#allocation8 + $0x2e0] ss:$16 sps:$4 sm:$0xff]  }
  0x40   :  { %1590 = vmatprep.subr.msk.bf16.mxu0 %vm132_vm0, %v1587_v4  ;;  %1592 = vmatprep.subr.msk.bf16.mxu1 %vm132_vm0, %v1589_v5  ;;  %v134_v9 = vsel %vm132_vm0, %v1586_v6, 0  ;;  %v1819_v13 = vld [vmem:[#allocation8 + $0x2e4] ss:$16 sps:$4 sm:$0xff]   ;;  %v1820_v17 = vld [vmem:[#allocation8 + $0xc0] ss:$16 sps:$4 sm:$0xff]  }
  0x41   :  { %v140_v10 = vsel %vm132_vm0, %v1588_v7, 0  ;;  %160 = vmatpush1.bf16.msra.mxu0 %v134_v9  ;;  %v1822_v15 = vld [vmem:[#allocation8 + $0xc4] ss:$16 sps:$4 sm:$0xff]   ;;  %v1823_v18 = vld [vmem:[#allocation8 + $0x2c0] ss:$16 sps:$4 sm:$0xff]  }
  0x42   :  { %201 = vmatpush1.bf16.msra.mxu1 %v140_v10  ;;  %1025 = vmatprep.subr.bf16.mxu0 %v1816_v8  ;;  %v1825_v16 = vld [vmem:[#allocation8 + $0x2c4] ss:$16 sps:$4 sm:$0xff]   ;;  %v1826_v21 = vld [vmem:[#allocation8 + $0xa0] ss:$16 sps:$4 sm:$0xff]  }
  0x43   :  { %1066 = vmatprep.subr.bf16.mxu1 %v1819_v13  ;;  %v1828_v19 = vld [vmem:[#allocation8 + $0xa4] ss:$16 sps:$4 sm:$0xff]   ;;  %v1829_v22 = vld [vmem:[#allocation8 + $0x2a0] ss:$16 sps:$4 sm:$0xff]   ;;  %v98_v13 = vlaneseq }
  0x44   :  { %1591 = vmatmul.mubr.msk.bf16.vlgmr.msra.gmra.mxu0 %vm128_vm1, %v93_v11  ;;  %v1831_v20 = vld [vmem:[#allocation8 + $0x2a4] ss:$16 sps:$4 sm:$0xff]   ;;  %v1832_v25 = vld [vmem:[#allocation8 + $0x80] ss:$16 sps:$4 sm:$0xff]  }
  0x45   :  { %1593 = vmatmul.mubr.msk.bf16.vlgmr.msra.gmra.mxu1 %vm128_vm1, %v93_v11  ;;  %1026 = vmatpush1.bf16.msra.mxu0 %v1814_v12  ;;  %v1834_v23 = vld [vmem:[#allocation8 + $0x84] ss:$16 sps:$4 sm:$0xff]   ;;  %v1835_v26 = vld [vmem:[#allocation8 + $0x280] ss:$16 sps:$4 sm:$0xff]   ;;  %v1912_v11 = vld [vmem:[#allocation8 + $0xec] ss:$16 sps:$4 sm:$0xff]  }
  0x46   :  { %1067 = vmatpush1.bf16.msra.mxu1 %v1817_v14  ;;  %1027 = vmatprep.subr.bf16.mxu0 %v1822_v15  ;;  %v1837_v24 = vld [vmem:[#allocation8 + $0x284] ss:$16 sps:$4 sm:$0xff]   ;;  %v1838_v29 = vld [vmem:[#allocation8 + $0x60] ss:$16 sps:$4 sm:$0xff]   ;;  %v1915_v12 = vld [vmem:[#allocation8 + $0x2ec] ss:$16 sps:$4 sm:$0xff]  }
  0x47   :  { %1068 = vmatprep.subr.bf16.mxu1 %v1825_v16  ;;  %v1840_v27 = vld [vmem:[#allocation8 + $0x64] ss:$16 sps:$4 sm:$0xff]   ;;  %v1841_v30 = vld [vmem:[#allocation8 + $0x260] ss:$16 sps:$4 sm:$0xff]   ;;  %v2238_v14 = vshrl.u32 %v98_v13, 7 }
  0x48   :  { %v1843_v28 = vld [vmem:[#allocation8 + $0x264] ss:$16 sps:$4 sm:$0xff]   ;;  %v1844_v33 = vld [vmem:[#allocation8 + $0x40] ss:$16 sps:$4 sm:$0xff]  }
  0x49   :  { %1028 = vmatpush1.bf16.msra.mxu0 %v1820_v17  ;;  %v1846_v31 = vld [vmem:[#allocation8 + $0x44] ss:$16 sps:$4 sm:$0xff]   ;;  %v1847_v34 = vld [vmem:[#allocation8 + $0x240] ss:$16 sps:$4 sm:$0xff]   ;;  %v100_v15 = vsub.s32 0, %v2238_v14  ;;  %v108_v16 = vsub.s32 2, %v2238_v14 }
  0x4a   :  { %1069 = vmatpush1.bf16.msra.mxu1 %v1823_v18  ;;  %1029 = vmatprep.subr.bf16.mxu0 %v1828_v19  ;;  %v1849_v32 = vld [vmem:[#allocation8 + $0x244] ss:$16 sps:$4 sm:$0xff]   ;;  %v1850_v37 = vld [vmem:[#allocation8 + $0x20] ss:$16 sps:$4 sm:$0xff]   ;;  %v96_v17 = vld [vmem:[#allocation7] sm:$0xf] }
  0x4b   :  { %1070 = vmatprep.subr.bf16.mxu1 %v1831_v20  ;;  %v1852_v35 = vld [vmem:[#allocation8 + $0x24] ss:$16 sps:$4 sm:$0xff]   ;;  %v1853_v38 = vld [vmem:[#allocation8 + $0x220] ss:$16 sps:$4 sm:$0xff]   ;;  %v104_v18 = vsub.s32 1, %v2238_v14  ;;  %v112_v19 = vsub.s32 3, %v2238_v14  ;;  %v101_v20 = vrot.slane %v96_v17, %v100_v15 }
  0x4c   :  { %v1855_v36 = vld [vmem:[#allocation8 + $0x224] ss:$16 sps:$4 sm:$0xff]   ;;  %v1856_v41 = vld [vmem:[#allocation8] ss:$16 sps:$4 sm:$0xff]  }
  0x4d   :  { %1030 = vmatpush1.bf16.msra.mxu0 %v1826_v21  ;;  %v1858_v39 = vld [vmem:[#allocation8 + $0x4] ss:$16 sps:$4 sm:$0xff]   ;;  %v1859_v42 = vld [vmem:[#allocation8 + $0x200] ss:$16 sps:$4 sm:$0xff]   ;;  %v109_v21 = vrot.slane %v96_v17, %v108_v16 }
  0x4e   :  { %1071 = vmatpush1.bf16.msra.mxu1 %v1829_v22  ;;  %1031 = vmatprep.subr.bf16.mxu0 %v1834_v23  ;;  %v1861_v40 = vld [vmem:[#allocation8 + $0x204] ss:$16 sps:$4 sm:$0xff]   ;;  %v1862_v45 = vld [vmem:[#allocation8 + $0x1e0] ss:$16 sps:$4 sm:$0xff]   ;;  %v105_v22 = vrot.slane %v96_v17, %v104_v18  ;;  %v113_v23 = vrot.slane %v96_v17, %v112_v19  ;;  %v1961_v17 = vld [vmem:[#allocation8 + $0x3e8] ss:$16 sps:$4 sm:$0xff]  }
  0x4f   :  { %1072 = vmatprep.subr.bf16.mxu1 %v1837_v24  ;;  %v1864_v43 = vld [vmem:[#allocation8 + $0x1e4] ss:$16 sps:$4 sm:$0xff]   ;;  %v1865_v46 = vld [vmem:[#allocation8 + $0x3e0] ss:$16 sps:$4 sm:$0xff]  }
  0x50   :  { %v1867_v44 = vld [vmem:[#allocation8 + $0x3e4] ss:$16 sps:$4 sm:$0xff]   ;;  %v1868_v49 = vld [vmem:[#allocation8 + $0x1c0] ss:$16 sps:$4 sm:$0xff]  }
  0x51   :  { %1032 = vmatpush1.bf16.msra.mxu0 %v1832_v25  ;;  %v1870_v47 = vld [vmem:[#allocation8 + $0x1c4] ss:$16 sps:$4 sm:$0xff]   ;;  %v1871_v50 = vld [vmem:[#allocation8 + $0x3c0] ss:$16 sps:$4 sm:$0xff]  }
  0x52   :  { %1073 = vmatpush1.bf16.msra.mxu1 %v1835_v26  ;;  %1033 = vmatprep.subr.bf16.mxu0 %v1840_v27  ;;  %v1873_v48 = vld [vmem:[#allocation8 + $0x3c4] ss:$16 sps:$4 sm:$0xff]   ;;  %v1874_v53 = vld [vmem:[#allocation8 + $0x1a0] ss:$16 sps:$4 sm:$0xff]  }
  0x53   :  { %1074 = vmatprep.subr.bf16.mxu1 %v1843_v28  ;;  %v1876_v51 = vld [vmem:[#allocation8 + $0x1a4] ss:$16 sps:$4 sm:$0xff]   ;;  %v1877_v54 = vld [vmem:[#allocation8 + $0x3a0] ss:$16 sps:$4 sm:$0xff]  }
  0x54   :  { %v1879_v52 = vld [vmem:[#allocation8 + $0x3a4] ss:$16 sps:$4 sm:$0xff]   ;;  %v1880_v57 = vld [vmem:[#allocation8 + $0x180] ss:$16 sps:$4 sm:$0xff]  }
  0x55   :  { %1034 = vmatpush1.bf16.msra.mxu0 %v1838_v29  ;;  %v1882_v55 = vld [vmem:[#allocation8 + $0x184] ss:$16 sps:$4 sm:$0xff]   ;;  %v1883_v58 = vld [vmem:[#allocation8 + $0x380] ss:$16 sps:$4 sm:$0xff]  }
  0x56   :  { %1075 = vmatpush1.bf16.msra.mxu1 %v1841_v30  ;;  %1035 = vmatprep.subr.bf16.mxu0 %v1846_v31  ;;  %v1885_v56 = vld [vmem:[#allocation8 + $0x384] ss:$16 sps:$4 sm:$0xff]   ;;  %v1886_v61 = vld [vmem:[#allocation8 + $0x160] ss:$16 sps:$4 sm:$0xff]  }
  0x57   :  { %1076 = vmatprep.subr.bf16.mxu1 %v1849_v32  ;;  %v1888_v59 = vld [vmem:[#allocation8 + $0x164] ss:$16 sps:$4 sm:$0xff]   ;;  %v1889_v62 = vld [vmem:[#allocation8 + $0x360] ss:$16 sps:$4 sm:$0xff]  }
  0x58   :  { %v1891_v60 = vld [vmem:[#allocation8 + $0x364] ss:$16 sps:$4 sm:$0xff]   ;;  %v1892_v1 = vld [vmem:[#allocation8 + $0x140] ss:$16 sps:$4 sm:$0xff]  }
  0x59   :  { %1036 = vmatpush1.bf16.msra.mxu0 %v1844_v33  ;;  %v1894_v63 = vld [vmem:[#allocation8 + $0x144] ss:$16 sps:$4 sm:$0xff]   ;;  %v1895_v2 = vld [vmem:[#allocation8 + $0x340] ss:$16 sps:$4 sm:$0xff]  }
  0x5a   :  { %1077 = vmatpush1.bf16.msra.mxu1 %v1847_v34  ;;  %1037 = vmatprep.subr.bf16.mxu0 %v1852_v35  ;;  %v1897_v0 = vld [vmem:[#allocation8 + $0x344] ss:$16 sps:$4 sm:$0xff]   ;;  %v1898_v5 = vld [vmem:[#allocation8 + $0x120] ss:$16 sps:$4 sm:$0xff]  }
  0x5b   :  { %1078 = vmatprep.subr.bf16.mxu1 %v1855_v36  ;;  %v1900_v3 = vld [vmem:[#allocation8 + $0x124] ss:$16 sps:$4 sm:$0xff]   ;;  %v1901_v6 = vld [vmem:[#allocation8 + $0x320] ss:$16 sps:$4 sm:$0xff]  }
  0x5c   :  { %v1903_v4 = vld [vmem:[#allocation8 + $0x324] ss:$16 sps:$4 sm:$0xff]   ;;  %v1904_v9 = vld [vmem:[#allocation8 + $0x100] ss:$16 sps:$4 sm:$0xff]  }
  0x5d   :  { %1038 = vmatpush1.bf16.msra.mxu0 %v1850_v37  ;;  %v1906_v7 = vld [vmem:[#allocation8 + $0x104] ss:$16 sps:$4 sm:$0xff]   ;;  %v1907_v10 = vld [vmem:[#allocation8 + $0x300] ss:$16 sps:$4 sm:$0xff]  }
  0x5e   :  { %1079 = vmatpush1.bf16.msra.mxu1 %v1853_v38  ;;  %1039 = vmatprep.subr.bf16.mxu0 %v1858_v39  ;;  %v1909_v8 = vld [vmem:[#allocation8 + $0x304] ss:$16 sps:$4 sm:$0xff]  }
  0x5f   :  { %1080 = vmatprep.subr.bf16.mxu1 %v1861_v40 }
  0x61   :  { %1040 = vmatpush1.bf16.msra.mxu0 %v1856_v41 }
  0x62   :  { %1081 = vmatpush1.bf16.msra.mxu1 %v1859_v42  ;;  %1041 = vmatprep.subr.bf16.mxu0 %v1864_v43  ;;  %v1910_v43 = vld [vmem:[#allocation8 + $0xe8] ss:$16 sps:$4 sm:$0xff]  }
  0x63   :  { %1082 = vmatprep.subr.bf16.mxu1 %v1867_v44  ;;  %v1913_v44 = vld [vmem:[#allocation8 + $0x2e8] ss:$16 sps:$4 sm:$0xff]  }
  0x65   :  { %1042 = vmatpush2.bf16.msra.mxu0 %v1862_v45 }
  0x66   :  { %1083 = vmatpush2.bf16.msra.mxu1 %v1865_v46  ;;  %1043 = vmatprep.subr.bf16.mxu0 %v1870_v47  ;;  %v1918_v46 = vld [vmem:[#allocation8 + $0xcc] ss:$16 sps:$4 sm:$0xff]  }
  0x67   :  { %1084 = vmatprep.subr.bf16.mxu1 %v1873_v48  ;;  %v1921_v47 = vld [vmem:[#allocation8 + $0x2cc] ss:$16 sps:$4 sm:$0xff]   ;;  %v1916_v48 = vld [vmem:[#allocation8 + $0xc8] ss:$16 sps:$4 sm:$0xff]  }
  0x69   :  { %1044 = vmatpush2.bf16.msra.mxu0 %v1868_v49  ;;  %v1919_v49 = vld [vmem:[#allocation8 + $0x2c8] ss:$16 sps:$4 sm:$0xff]  }
  0x6a   :  { %1085 = vmatpush2.bf16.msra.mxu1 %v1871_v50  ;;  %1045 = vmatprep.subr.bf16.mxu0 %v1876_v51  ;;  %v1924_v50 = vld [vmem:[#allocation8 + $0xac] ss:$16 sps:$4 sm:$0xff]  }
  0x6b   :  { %1086 = vmatprep.subr.bf16.mxu1 %v1879_v52  ;;  %v1927_v51 = vld [vmem:[#allocation8 + $0x2ac] ss:$16 sps:$4 sm:$0xff]   ;;  %v1922_v52 = vld [vmem:[#allocation8 + $0xa8] ss:$16 sps:$4 sm:$0xff]  }
  0x6d   :  { %1046 = vmatpush2.bf16.msra.mxu0 %v1874_v53  ;;  %v1925_v53 = vld [vmem:[#allocation8 + $0x2a8] ss:$16 sps:$4 sm:$0xff]  }
  0x6e   :  { %1087 = vmatpush2.bf16.msra.mxu1 %v1877_v54  ;;  %1047 = vmatprep.subr.bf16.mxu0 %v1882_v55  ;;  %v1930_v54 = vld [vmem:[#allocation8 + $0x8c] ss:$16 sps:$4 sm:$0xff]  }
  0x6f   :  { %1088 = vmatprep.subr.bf16.mxu1 %v1885_v56  ;;  %v1933_v55 = vld [vmem:[#allocation8 + $0x28c] ss:$16 sps:$4 sm:$0xff]   ;;  %v1928_v56 = vld [vmem:[#allocation8 + $0x88] ss:$16 sps:$4 sm:$0xff]  }
  0x71   :  { %1048 = vmatpush2.bf16.msra.mxu0 %v1880_v57  ;;  %v1931_v57 = vld [vmem:[#allocation8 + $0x288] ss:$16 sps:$4 sm:$0xff]  }
  0x72   :  { %1089 = vmatpush2.bf16.msra.mxu1 %v1883_v58  ;;  %1049 = vmatprep.subr.bf16.mxu0 %v1888_v59  ;;  %v1936_v58 = vld [vmem:[#allocation8 + $0x6c] ss:$16 sps:$4 sm:$0xff]  }
  0x73   :  { %1090 = vmatprep.subr.bf16.mxu1 %v1891_v60  ;;  %v1939_v59 = vld [vmem:[#allocation8 + $0x26c] ss:$16 sps:$4 sm:$0xff]   ;;  %v1934_v60 = vld [vmem:[#allocation8 + $0x68] ss:$16 sps:$4 sm:$0xff]  }
  0x75   :  { %1050 = vmatpush2.bf16.msra.mxu0 %v1886_v61  ;;  %v1937_v61 = vld [vmem:[#allocation8 + $0x268] ss:$16 sps:$4 sm:$0xff]  }
  0x76   :  { %1091 = vmatpush2.bf16.msra.mxu1 %v1889_v62  ;;  %1051 = vmatprep.subr.bf16.mxu0 %v1894_v63  ;;  %v1942_v62 = vld [vmem:[#allocation8 + $0x4c] ss:$16 sps:$4 sm:$0xff]  }
  0x77   :  { %1092 = vmatprep.subr.bf16.mxu1 %v1897_v0  ;;  %v1945_v63 = vld [vmem:[#allocation8 + $0x24c] ss:$16 sps:$4 sm:$0xff]   ;;  %v1940_v0 = vld [vmem:[#allocation8 + $0x48] ss:$16 sps:$4 sm:$0xff]  }
  0x79   :  { %1052 = vmatpush2.bf16.msra.mxu0 %v1892_v1  ;;  %v1943_v1 = vld [vmem:[#allocation8 + $0x248] ss:$16 sps:$4 sm:$0xff]  }
  0x7a   :  { %1093 = vmatpush2.bf16.msra.mxu1 %v1895_v2  ;;  %1053 = vmatprep.subr.bf16.mxu0 %v1900_v3  ;;  %v1948_v2 = vld [vmem:[#allocation8 + $0x2c] ss:$16 sps:$4 sm:$0xff]  }
  0x7b   :  { %1094 = vmatprep.subr.bf16.mxu1 %v1903_v4  ;;  %v1951_v3 = vld [vmem:[#allocation8 + $0x22c] ss:$16 sps:$4 sm:$0xff]   ;;  %v1946_v4 = vld [vmem:[#allocation8 + $0x28] ss:$16 sps:$4 sm:$0xff]  }
  0x7d   :  { %1054 = vmatpush2.bf16.msra.mxu0 %v1898_v5  ;;  %v1949_v5 = vld [vmem:[#allocation8 + $0x228] ss:$16 sps:$4 sm:$0xff]  }
  0x7e   :  { %1095 = vmatpush2.bf16.msra.mxu1 %v1901_v6  ;;  %1055 = vmatprep.subr.bf16.mxu0 %v1906_v7  ;;  %v1954_v6 = vld [vmem:[#allocation8 + $0xc] ss:$16 sps:$4 sm:$0xff]  }
  0x7f   :  { %1096 = vmatprep.subr.bf16.mxu1 %v1909_v8  ;;  %v1957_v7 = vld [vmem:[#allocation8 + $0x20c] ss:$16 sps:$4 sm:$0xff]   ;;  %v1952_v8 = vld [vmem:[#allocation8 + $0x8] ss:$16 sps:$4 sm:$0xff]  }
  0x81   :  { %1056 = vmatpush2.bf16.msra.mxu0 %v1904_v9  ;;  %v1955_v9 = vld [vmem:[#allocation8 + $0x208] ss:$16 sps:$4 sm:$0xff]  }
  0x82   :  { %1097 = vmatpush2.bf16.msra.mxu1 %v1907_v10  ;;  %1107 = vmatprep.subr.bf16.mxu0 %v1912_v11  ;;  %v1960_v10 = vld [vmem:[#allocation8 + $0x1ec] ss:$16 sps:$4 sm:$0xff]  }
  0x83   :  { %1148 = vmatprep.subr.bf16.mxu1 %v1915_v12  ;;  %v1963_v11 = vld [vmem:[#allocation8 + $0x3ec] ss:$16 sps:$4 sm:$0xff]   ;;  %v1958_v12 = vld [vmem:[#allocation8 + $0x1e8] ss:$16 sps:$4 sm:$0xff]  }
 0x104   :  { %v179_v24 = vpop.f32.mrf.mxu0 }
 0x105   :  { %v220_v25 = vpop.f32.mrf.mxu1  ;;  %v180_v26 = vadd.f32 %v179_v24, %v101_v20  ;;  %v1966_v20 = vld [vmem:[#allocation8 + $0x1cc] ss:$16 sps:$4 sm:$0xff]  }
 0x106   :  { %v221_v27 = vadd.f32 %v220_v25, %v109_v21  ;;  %v181_v28 = vpop.f32.mrf.mxu0  ;;  %v1969_v21 = vld [vmem:[#allocation8 + $0x3cc] ss:$16 sps:$4 sm:$0xff]  }
 0x107   :  { %v222_v29 = vpop.f32.mrf.mxu1  ;;  %v182_v31 = vadd.f32 %v181_v28, %v105_v22  ;;  %v227_v33 = vmax.f32 %v180_v26, 0.0  ;;  %v1964_v22 = vld [vmem:[#allocation8 + $0x1c8] ss:$16 sps:$4 sm:$0xff]   ;;  %v1972_v24 = vld [vmem:[#allocation8 + $0x1ac] ss:$16 sps:$4 sm:$0xff]  }
 0x108   :  { %v229_v30 = vmax.f32 %v221_v27, 0.0  ;;  %v223_v32 = vadd.f32 %v222_v29, %v113_v23  ;;  %v183_v34 = vpop.f32.mrf.mxu0  ;;  %v1967_v23 = vld [vmem:[#allocation8 + $0x3c8] ss:$16 sps:$4 sm:$0xff]   ;;  %v1975_v25 = vld [vmem:[#allocation8 + $0x3ac] ss:$16 sps:$4 sm:$0xff]  }
 0x109   :  { %v224_v35 = vpop.f32.mrf.mxu1  ;;  %v228_v36 = vmax.f32 %v182_v31, 0.0  ;;  %v2254_v45 = vpack.c.bf16 %v227_v33, %v227_v33  ;;  %v1970_v26 = vld [vmem:[#allocation8 + $0x1a8] ss:$16 sps:$4 sm:$0xff]   ;;  %v1978_v28 = vld [vmem:[#allocation8 + $0x18c] ss:$16 sps:$4 sm:$0xff]  }
 0x10a   :  { %v230_v37 = vmax.f32 %v223_v32, 0.0  ;;  %v2252_v38 = vpack.c.bf16 %v229_v30, %v229_v30  ;;  %v184_v39 = vpop.f32.mrf.mxu0  ;;  %v1973_v27 = vld [vmem:[#allocation8 + $0x3a8] ss:$16 sps:$4 sm:$0xff]   ;;  %v1981_v29 = vld [vmem:[#allocation8 + $0x38c] ss:$16 sps:$4 sm:$0xff]  }
 0x10b   :  { %v225_v40 = vpop.f32.mrf.mxu1  ;;  %v232_v41 = vpack.c.bf16 %v228_v36, %v228_v36  ;;  %v1976_v30 = vld [vmem:[#allocation8 + $0x188] ss:$16 sps:$4 sm:$0xff]   ;;  %v1984_v32 = vld [vmem:[#allocation8 + $0x16c] ss:$16 sps:$4 sm:$0xff]  }
 0x10c   :  { %v234_v42 = vpack.c.bf16 %v230_v37, %v230_v37  ;;  %v1979_v31 = vld [vmem:[#allocation8 + $0x388] ss:$16 sps:$4 sm:$0xff]   ;;  %v1987_v33 = vld [vmem:[#allocation8 + $0x36c] ss:$16 sps:$4 sm:$0xff]  }
 0x10d   :  { %1057 = vmatprep.mubr.bf16.mxu0 %v232_v41  ;;  %v1982_v34 = vld [vmem:[#allocation8 + $0x168] ss:$16 sps:$4 sm:$0xff]   ;;  %v1990_v36 = vld [vmem:[#allocation8 + $0x14c] ss:$16 sps:$4 sm:$0xff]  }
 0x10e   :  { %1098 = vmatprep.mubr.bf16.mxu1 %v234_v42  ;;  %1058 = vmatmul.mubr.bf16.vlgmr.msra.gmra.mxu0 %v2254_v45  ;;  %v1985_v35 = vld [vmem:[#allocation8 + $0x368] ss:$16 sps:$4 sm:$0xff]   ;;  %v1993_v37 = vld [vmem:[#allocation8 + $0x34c] ss:$16 sps:$4 sm:$0xff]  }
 0x10f   :  { %1099 = vmatmul.mubr.bf16.vlgmr.msra.gmra.mxu1 %v2252_v38  ;;  %1108 = vmatpush1.bf16.msra.mxu0 %v1910_v43  ;;  %v1988_v39 = vld [vmem:[#allocation8 + $0x148] ss:$16 sps:$4 sm:$0xff]  }
 0x110   :  { %1149 = vmatpush1.bf16.msra.mxu1 %v1913_v44  ;;  %1139 = vmatprep.mubr.bf16.mxu0 %v232_v41  ;;  %v1991_v40 = vld [vmem:[#allocation8 + $0x348] ss:$16 sps:$4 sm:$0xff]   ;;  %v1996_v41 = vld [vmem:[#allocation8 + $0x12c] ss:$16 sps:$4 sm:$0xff]  }
 0x111   :  { %1180 = vmatprep.mubr.bf16.mxu1 %v234_v42  ;;  %1109 = vmatprep.subr.bf16.mxu0 %v1918_v46  ;;  %v1999_v42 = vld [vmem:[#allocation8 + $0x32c] ss:$16 sps:$4 sm:$0xff]   ;;  %v1994_v43 = vld [vmem:[#allocation8 + $0x128] ss:$16 sps:$4 sm:$0xff]  }
 0x112   :  { %1150 = vmatprep.subr.bf16.mxu1 %v1921_v47  ;;  %v1997_v44 = vld [vmem:[#allocation8 + $0x328] ss:$16 sps:$4 sm:$0xff]   ;;  %v2002_v46 = vld [vmem:[#allocation8 + $0x10c] ss:$16 sps:$4 sm:$0xff]  }
 0x113   :  { %1110 = vmatpush1.bf16.msra.mxu0 %v1916_v48  ;;  %v2005_v47 = vld [vmem:[#allocation8 + $0x30c] ss:$16 sps:$4 sm:$0xff]   ;;  %v2000_v48 = vld [vmem:[#allocation8 + $0x108] ss:$16 sps:$4 sm:$0xff]  }
 0x114   :  { %1151 = vmatpush1.bf16.msra.mxu1 %v1919_v49  ;;  %1111 = vmatprep.subr.bf16.mxu0 %v1924_v50  ;;  %v2003_v49 = vld [vmem:[#allocation8 + $0x308] ss:$16 sps:$4 sm:$0xff]  }
 0x115   :  { %1152 = vmatprep.subr.bf16.mxu1 %v1927_v51  ;;  %v2006_v50 = vld [vmem:[#allocation10 + $0x78] sm:$0xff]  }
 0x116   :  { %v2007_v51 = vld [vmem:[#allocation10 + $0x38] sm:$0xff]  }
 0x117   :  { %1112 = vmatpush1.bf16.msra.mxu0 %v1922_v52  ;;  %v2008_v52 = vld [vmem:[#allocation10 + $0x70] sm:$0xff]  }
 0x118   :  { %1153 = vmatpush1.bf16.msra.mxu1 %v1925_v53  ;;  %1113 = vmatprep.subr.bf16.mxu0 %v1930_v54  ;;  %v2009_v53 = vld [vmem:[#allocation10 + $0x30] sm:$0xff]   ;;  %v2010_v54 = vld [vmem:[#allocation10 + $0x68] sm:$0xff]  }
 0x119   :  { %1154 = vmatprep.subr.bf16.mxu1 %v1933_v55  ;;  %v2011_v55 = vld [vmem:[#allocation10 + $0x28] sm:$0xff]  }
 0x11b   :  { %1114 = vmatpush1.bf16.msra.mxu0 %v1928_v56  ;;  %v2012_v56 = vld [vmem:[#allocation10 + $0x60] sm:$0xff]  }
 0x11c   :  { %1155 = vmatpush1.bf16.msra.mxu1 %v1931_v57  ;;  %1115 = vmatprep.subr.bf16.mxu0 %v1936_v58  ;;  %v2013_v57 = vld [vmem:[#allocation10 + $0x20] sm:$0xff]   ;;  %v2014_v58 = vld [vmem:[#allocation10 + $0x58] sm:$0xff]  }
 0x11d   :  { %1156 = vmatprep.subr.bf16.mxu1 %v1939_v59  ;;  %v2022_v59 = vld [vmem:[#allocation10 + $0xf8] sm:$0xff]  }
 0x11f   :  { %1116 = vmatpush1.bf16.msra.mxu0 %v1934_v60  ;;  %v2023_v60 = vld [vmem:[#allocation10 + $0xb8] sm:$0xff]  }
 0x120   :  { %1157 = vmatpush1.bf16.msra.mxu1 %v1937_v61  ;;  %1117 = vmatprep.subr.bf16.mxu0 %v1942_v62  ;;  %v2024_v61 = vld [vmem:[#allocation10 + $0xf0] sm:$0xff]   ;;  %v2015_v62 = vld [vmem:[#allocation10 + $0x18] sm:$0xff]  }
 0x121   :  { %1158 = vmatprep.subr.bf16.mxu1 %v1945_v63  ;;  %v2026_v63 = vld [vmem:[#allocation10 + $0xe8] sm:$0xff]  }
 0x123   :  { %1118 = vmatpush1.bf16.msra.mxu0 %v1940_v0  ;;  %v2017_v0 = vld [vmem:[#allocation10 + $0x10] sm:$0xff]  }
 0x124   :  { %1159 = vmatpush1.bf16.msra.mxu1 %v1943_v1  ;;  %1119 = vmatprep.subr.bf16.mxu0 %v1948_v2  ;;  %v2018_v1 = vld [vmem:[#allocation10 + $0x48] sm:$0xff]  }
 0x125   :  { %1160 = vmatprep.subr.bf16.mxu1 %v1951_v3  ;;  %v2027_v2 = vld [vmem:[#allocation10 + $0xa8] sm:$0xff]   ;;  %v2028_v3 = vld [vmem:[#allocation10 + $0xe0] sm:$0xff]  }
 0x127   :  { %1120 = vmatpush1.bf16.msra.mxu0 %v1946_v4  ;;  %v2019_v4 = vld [vmem:[#allocation10 + $0x8] sm:$0xff]  }
 0x128   :  { %1161 = vmatpush1.bf16.msra.mxu1 %v1949_v5  ;;  %1121 = vmatprep.subr.bf16.mxu0 %v1954_v6  ;;  %v2020_v5 = vld [vmem:[#allocation10 + $0x40] sm:$0xff]  }
 0x129   :  { %1162 = vmatprep.subr.bf16.mxu1 %v1957_v7  ;;  %v2029_v6 = vld [vmem:[#allocation10 + $0xa0] sm:$0xff]   ;;  %v2030_v7 = vld [vmem:[#allocation10 + $0xd8] sm:$0xff]  }
 0x12b   :  { %1122 = vmatpush1.bf16.msra.mxu0 %v1952_v8  ;;  %v2021_v8 = vld [vmem:[#allocation10] sm:$0xff]  }
 0x12c   :  { %1163 = vmatpush1.bf16.msra.mxu1 %v1955_v9  ;;  %1123 = vmatprep.subr.bf16.mxu0 %v1960_v10  ;;  %v2031_v9 = vld [vmem:[#allocation10 + $0x98] sm:$0xff]   ;;  %v2032_v10 = vld [vmem:[#allocation10 + $0xd0] sm:$0xff]  }
 0x12d   :  { %1164 = vmatprep.subr.bf16.mxu1 %v1963_v11  ;;  %v2033_v11 = vld [vmem:[#allocation10 + $0x90] sm:$0xff]  }
 0x12f   :  { %1124 = vmatpush2.bf16.msra.mxu0 %v1958_v12  ;;  %v2034_v12 = vld [vmem:[#allocation10 + $0xc8] sm:$0xff]  }
 0x130   :  { %1165 = vmatpush2.bf16.msra.mxu1 %v1961_v17  ;;  %1125 = vmatprep.subr.bf16.mxu0 %v1966_v20  ;;  %v2035_v17 = vld [vmem:[#allocation10 + $0x88] sm:$0xff]   ;;  %v2036_v20 = vld [vmem:[#allocation10 + $0xc0] sm:$0xff]  }
 0x131   :  { %1166 = vmatprep.subr.bf16.mxu1 %v1969_v21  ;;  %v2037_v21 = vld [vmem:[#allocation10 + $0x80] sm:$0xff]  }
 0x133   :  { %1126 = vmatpush2.bf16.msra.mxu0 %v1964_v22  ;;  %v363_v22 = vld [vmem:[%s2285_s4] sm:$0xf] }
 0x134   :  { %1167 = vmatpush2.bf16.msra.mxu1 %v1967_v23  ;;  %1127 = vmatprep.subr.bf16.mxu0 %v1972_v24  ;;  %v368_v23 = vrot.slane %v363_v22, %v100_v15  ;;  %v372_v24 = vrot.slane %v363_v22, %v104_v18  ;;  %v376_v15 = vrot.slane %v363_v22, %v108_v16 }
 0x135   :  { %1168 = vmatprep.subr.bf16.mxu1 %v1975_v25  ;;  %v380_v18 = vrot.slane %v363_v22, %v112_v19 }
 0x137   :  { %1128 = vmatpush2.bf16.msra.mxu0 %v1970_v26 }
 0x138   :  { %1169 = vmatpush2.bf16.msra.mxu1 %v1973_v27  ;;  %1129 = vmatprep.subr.bf16.mxu0 %v1978_v28 }
 0x139   :  { %1170 = vmatprep.subr.bf16.mxu1 %v1981_v29 }
 0x13b   :  { %1130 = vmatpush2.bf16.msra.mxu0 %v1976_v30 }
 0x13c   :  { %1171 = vmatpush2.bf16.msra.mxu1 %v1979_v31  ;;  %1131 = vmatprep.subr.bf16.mxu0 %v1984_v32 }
 0x13d   :  { %1172 = vmatprep.subr.bf16.mxu1 %v1987_v33 }
 0x13f   :  { %1132 = vmatpush2.bf16.msra.mxu0 %v1982_v34 }
 0x140   :  { %1173 = vmatpush2.bf16.msra.mxu1 %v1985_v35  ;;  %1133 = vmatprep.subr.bf16.mxu0 %v1990_v36 }
 0x141   :  { %1174 = vmatprep.subr.bf16.mxu1 %v1993_v37 }
 0x143   :  { %1134 = vmatpush2.bf16.msra.mxu0 %v1988_v39 }
 0x144   :  { %1175 = vmatpush2.bf16.msra.mxu1 %v1991_v40  ;;  %1135 = vmatprep.subr.bf16.mxu0 %v1996_v41 }
 0x145   :  { %1176 = vmatprep.subr.bf16.mxu1 %v1999_v42 }
 0x147   :  { %1136 = vmatpush2.bf16.msra.mxu0 %v1994_v43 }
 0x148   :  { %1177 = vmatpush2.bf16.msra.mxu1 %v1997_v44  ;;  %1137 = vmatprep.subr.bf16.mxu0 %v2002_v46 }
 0x149   :  { %1178 = vmatprep.subr.bf16.mxu1 %v2005_v47 }
 0x14b   :  { %1138 = vmatpush2.bf16.msra.mxu0 %v2000_v48 }
 0x14c   :  { %1179 = vmatpush2.bf16.msra.mxu1 %v2003_v49  ;;  %1755 = vmatprep.subr.bf16.mxu0 %v2006_v50 }
 0x14d   :  { %1777 = vmatprep.subr.bf16.mxu1 %v2022_v59 }
 0x14e   :  { %1140 = vmatmul.mubr.bf16.vlgmr.msra.gmra.mxu0 %v2254_v45  ;;  %v2016_v45 = vld [vmem:[#allocation10 + $0x50] sm:$0xff]  }
 0x14f   :  { %1181 = vmatmul.mubr.bf16.vlgmr.msra.gmra.mxu1 %v2252_v38  ;;  %1756 = vmatpush3.bf16.msra.mxu0 %v2007_v51  ;;  %v2025_v38 = vld [vmem:[#allocation10 + $0xb0] sm:$0xff]  }
 0x150   :  { %1757 = vmatprep.subr.bf16.mxu0 %v2008_v52  ;;  %1778 = vmatpush3.bf16.msra.mxu1 %v2023_v60 }
 0x151   :  { %1779 = vmatprep.subr.bf16.mxu1 %v2024_v61  ;;  %v1722_v61 = vld [vmem:[%s2287_s6] ss:$0 sm:$0xff]  ;;  %s2176_s6 = smov [#allocation11]  }
 0x152   :  { %s1571_s10 = sshll.u32 %s2176_s6, 4  ;;  %s1572_s10 = int_to_ptr.vmem [resolvable:$true] %s1571_s10 }
 0x153   :  { %1758 = vmatpush3.bf16.msra.mxu0 %v2009_v53  ;;  %s2138_s11 = scalar_lea.vmem %s1572_s10, 128  ;;  %p2143_p12 = scmp.lt.s32.totalorder %s1572_s10, %s1572_s10 }
 0x154   :  { %1759 = vmatprep.subr.bf16.mxu0 %v2010_v54  ;;  %1780 = vmatpush3.bf16.msra.mxu1 %v2025_v38  ;;  %p2139_p11 = scmp.ne.s32.totalorder %s1572_s10, %s2138_s11  ;;  %p2144_p13 = scmp.lt.s32.totalorder %s2138_s11, %s2138_s11 }
 0x155   :  { %1781 = vmatprep.subr.bf16.mxu1 %v2026_v63 }
 0x156   :  { %p2145_p0 = por %p2144_p13, %p2143_p12 }
 0x157   :  { %1760 = vmatpush3.bf16.msra.mxu0 %v2011_v55 }
 0x158   :  { %1761 = vmatprep.subr.bf16.mxu0 %v2012_v56  ;;  %1782 = vmatpush3.bf16.msra.mxu1 %v2027_v2  ;;  %p2146_p1 = pnand %p2145_p0, %p2139_p11 }
 0x159   :  { %1783 = vmatprep.subr.bf16.mxu1 %v2028_v3 }
 0x15b   :  { %1762 = vmatpush3.bf16.msra.mxu0 %v2013_v57 }
 0x15c   :  { %1763 = vmatprep.subr.bf16.mxu0 %v2014_v58  ;;  %1784 = vmatpush3.bf16.msra.mxu1 %v2029_v6 }
 0x15d   :  { %1785 = vmatprep.subr.bf16.mxu1 %v2030_v7 }
 0x15f   :  { %1764 = vmatpush3.bf16.msra.mxu0 %v2015_v62 }
 0x160   :  { %1765 = vmatprep.subr.bf16.mxu0 %v2016_v45  ;;  %1786 = vmatpush3.bf16.msra.mxu1 %v2031_v9  ;;  %v1542_v45 = vand.u32 127, %v98_v13 }
 0x161   :  { %1787 = vmatprep.subr.bf16.mxu1 %v2032_v10 }
 0x162   :  { %vm1543_vm2 = vcmp.lt.s32.totalorder %v1542_v45, 4 }
 0x163   :  { %1766 = vmatpush3.bf16.msra.mxu0 %v2017_v0 }
 0x164   :  { %1767 = vmatprep.subr.bf16.mxu0 %v2018_v1  ;;  %1788 = vmatpush3.bf16.msra.mxu1 %v2033_v11 }
 0x165   :  { %1789 = vmatprep.subr.bf16.mxu1 %v2034_v12 }
 0x167   :  { %1768 = vmatpush3.bf16.msra.mxu0 %v2019_v4 }
 0x168   :  { %1769 = vmatprep.subr.bf16.mxu0 %v2020_v5  ;;  %1790 = vmatpush3.bf16.msra.mxu1 %v2035_v17 }
 0x169   :  { %1791 = vmatprep.subr.bf16.mxu1 %v2036_v20 }
 0x16b   :  { %1770 = vmatpush3.bf16.msra.mxu0 %v2021_v8 }
 0x16c   :  { %1792 = vmatpush3.bf16.msra.mxu1 %v2037_v21 }
 0x1ce   :  { %v1059_v25 = vpop.f32.mrf.mxu0 }
 0x1cf   :  { %v1100_v26 = vpop.f32.mrf.mxu1  ;;  %v1060_v27 = vadd.f32 %v1059_v25, %v368_v23 }
 0x1d0   :  { %v1061_v28 = vpop.f32.mrf.mxu0 }
 0x1d1   :  { %v1102_v29 = vpop.f32.mrf.mxu1  ;;  %v1101_v30 = vadd.f32 %v1100_v26, %v1060_v27  ;;  %v1062_v31 = vadd.f32 %v1061_v28, %v372_v24 }
 0x1d2   :  { %v1063_v32 = vpop.f32.mrf.mxu0 }
 0x1d3   :  { %v1104_v33 = vpop.f32.mrf.mxu1  ;;  %v1103_v34 = vadd.f32 %v1102_v29, %v1062_v31  ;;  %v1189_v35 = vmax.f32 %v1101_v30, 0.0 }
 0x1d4   :  { %v1064_v36 = vpop.f32.mrf.mxu0 }
 0x1d5   :  { %v1105_v37 = vpop.f32.mrf.mxu1  ;;  %v1190_v39 = vmax.f32 %v1103_v34, 0.0  ;;  %v1193_v41 = vpack.c.bf16 %v1189_v35, %v1189_v35 }
 0x1d7   :  { %v1194_v40 = vpack.c.bf16 %v1190_v39, %v1190_v39 }
 0x1d9   :  { %1492 = vmatprep.mubr.bf16.mxu0 %v1194_v40 }
 0x1da   :  { %1493 = vmatmul.mubr.bf16.vlgmr.msra.gmra.mxu0 %v1193_v41 }
 0x20e   :  { %v1141_v42 = vpop.f32.mrf.mxu0 }
 0x20f   :  { %v1182_v43 = vpop.f32.mrf.mxu1  ;;  %v1142_v44 = vadd.f32 %v1141_v42, %v376_v15 }
 0x210   :  { %v1143_v46 = vpop.f32.mrf.mxu0 }
 0x211   :  { %v1184_v47 = vpop.f32.mrf.mxu1  ;;  %v1183_v48 = vadd.f32 %v1182_v43, %v1142_v44  ;;  %v1144_v49 = vadd.f32 %v1143_v46, %v380_v18 }
 0x212   :  { %v1145_v50 = vpop.f32.mrf.mxu0 }
 0x213   :  { %v1186_v51 = vpop.f32.mrf.mxu1  ;;  %v1185_v52 = vadd.f32 %v1184_v47, %v1144_v49  ;;  %v1191_v53 = vmax.f32 %v1183_v48, 0.0 }
 0x214   :  { %v1146_v54 = vpop.f32.mrf.mxu0 }
 0x215   :  { %v1187_v55 = vpop.f32.mrf.mxu1  ;;  %v1192_v56 = vmax.f32 %v1185_v52, 0.0  ;;  %v1195_v58 = vpack.c.bf16 %v1191_v53, %v1191_v53 }
 0x217   :  { %v1196_v57 = vpack.c.bf16 %v1192_v56, %v1192_v56 }
 0x219   :  { %1532 = vmatprep.mubr.bf16.mxu1 %v1196_v57 }
 0x21a   :  { %1533 = vmatmul.mubr.bf16.vlgmr.msra.gmra.mxu1 %v1195_v58 }
 0x29a   :  { %v1771_v14 = vpop.f32.mrf.mxu0 }
 0x29c   :  { %v1772_v16 = vpop.f32.mrf.mxu0 }
 0x29d   :  { %v1773_v60 = vadd.f32 %v1772_v16, %v1771_v14 }
 0x29e   :  { %v1774_v19 = vpop.f32.mrf.mxu0 }
 0x29f   :  { %v1495_v63 = vadd.f32 %v1773_v60, %v1722_v61 }
 0x2a0   :  { %v1775_v59 = vpop.f32.mrf.mxu0 }
 0x2da   :  { %v1793_v62 = vpop.f32.mrf.mxu1 }
 0x2dc   :  { %v1794_v38 = vpop.f32.mrf.mxu1 }
 0x2dd   :  { %v1795_v0 = vadd.f32 %v1794_v38, %v1793_v62 }
 0x2de   :  { %v1796_v1 = vpop.f32.mrf.mxu1 }
 0x2df   :  { %v1535_v2 = vadd.f32 %v1795_v0, %v1495_v63 }
 0x2e0   :  { %v1797_v3 = vpop.f32.mrf.mxu1 }
 0x2e1   :  { %v1544_v4 = vsel %vm1543_vm2, %v1535_v2, -3.4028235e+38  ;;  %1540 = vst [vmem:[#allocation11] sm:$0xff] %v1535_v2 }
 0x2e2   :  { %1545 = vmax.xlane.f32.xlu0 %v1544_v4 }
 0x36b   :  { %v1546_v5 = vpop.xlane.xlu0 %1545 }
 0x36c   :  { %vm1547_vm3 = vcmp.ge.f32.partialorder %v1544_v4, %v1546_v5 }
 0x36d   :  { %v1548_v6 = vsel %vm1547_vm3, %v1542_v45, 128 }
 0x36e   :  { %v1550_v7 = vshra.s32 %v1548_v6, 16  ;;  %v1549_v9 = vand.u32 65535, %v1548_v6 }
 0x370   :  { %v1552_v8 = vcvt.s32.f32 %v1550_v7  ;;  %v1551_v11 = vcvt.s32.f32 %v1549_v9 }
 0x372   :  { %1553 = vmin.xlane.f32.xlu0 %v1552_v8 }
 0x3fb   :  { %v1554_v10 = vpop.xlane.xlu0 %1553 }
 0x3fc   :  { %vm1555_vm4 = vcmp.eq.f32.partialorder %v1552_v8, %v1554_v10 }
 0x3fd   :  { %v1556_v13 = vsel %vm1555_vm4, %v1551_v11, inf }
 0x3fe   :  { %1557 = vmin.xlane.f32.xlu1 %v1556_v13 }
 0x3ff   :  { %2149 = shalt.err (!%p2146_p1)
}
 0x400   :  { %1574 = dma.vmem_to_hbm [thread:$0]  %s1572_s10, 128, %s2288_s7, [#allocation4]   ;;  %v1560_v12 = vcvt.f32.s32 %v1554_v10  ;;  %vm1563_vm5 = vcmask 7168  }
 0x402   :  { %v1561_v20 = vshll.u32 %v1560_v12, 16 }
 0x487   :  { %v1558_v17 = vpop.xlane.xlu1 %1557 }
 0x488   :  { %v1559_v21 = vcvt.f32.s32 %v1558_v17 }
 0x48a   :  { %v1562_v22 = vadd.s32 %v1561_v20, %v1559_v21 }
 0x48c   :  { %1564 = vst.msk [vmem:[%s2289_s8] sm:$0xff] %vm1563_vm5, %v1562_v22 }
 0x48d   :  { %2164 = dma.done.wait [#allocation4], 128  }
 0x48e   :  { %2165 = vsyncadd [#allocation4], 4294967168 }
 0x48f   :  { %1582 = vsyncpa [#allocation3], 1 }
 0x490   :  { %1583 = vsyncpa [#allocation6], 1 }
 0x491   :  { %1584 = vsyncpa [#allocation9], 1 }
 0x492   :  { %1585 = vsyncpa [#allocation4], 1 }

</bundles_post_ra>
